<compile_context>
chip_gen: v6e
topology: v6e:2x2x1
jax: 0.10.0
libtpu: 0.0.40
codegen_flags: <defaults>
</compile_context>

<pallas_src>
import functools

import jax
import jax.numpy as jnp
from jax.experimental import pallas as pl
from jax.experimental.pallas import tpu as pltpu


# ----------------------------- fused STRNNM forward kernel -----------------------------
def _strnnm_kernel(geo_c_ref, geo_rr_ref, jmap_ref, smap_ref, len_ref, xw_ref,
                   wh_ref, w1_ref, b1_ref, w2_ref, b2_ref, out_ref,
                   *, num_slots, time_window, dist_window):
    B, L, _ = geo_c_ref.shape
    K = geo_rr_ref.shape[-1]          # packed context axis: K = 2*(num_slots+1)*L
    H = wh_ref.shape[0]
    S1 = num_slots + 1

    gc = geo_c_ref[...]               # (B, L, 3)  [ts, lat, lng] at query position i
    grr = geo_rr_ref[...]             # (B, 3, K)  [ts, lat, lng] of source j(lane), pre-repeated
    jm = jmap_ref[...]                # (1, K) int32: source position j for each packed lane
    sm = smap_ref[...]                # (1, K) int32: stacked slot id (time: 0..S, dist: S1..2*S1-1)
    lens = len_ref[...]               # (B, 1) int32 valid lengths
    xw = xw_ref[...]                  # (B, K, H)  x @ 0.5*[time_w ; dist_w] in packed lane order

    # ---- pairwise context features, built directly in the packed (L, K) lane layout ----
    td = gc[:, :, 0:1] - grr[:, 0:1, :]                      # (B, L, K)  ts[i] - ts[j]
    dlat = gc[:, :, 1:2] - grr[:, 1:2, :]
    dlng = gc[:, :, 2:3] - grr[:, 2:3, :]
    ds = jnp.sqrt(dlat * dlat + dlng * dlng)                 # (B, L, K)

    # context_mask from STRNNM.forward, AND j <= i (STRNN only consumes x[:, :i+1]).
    row = jax.lax.broadcasted_iota(jnp.int32, (L, K), 0)     # query index i
    valid = ((td <= time_window) & (td >= 0.0)
             & (jm <= row)[None]
             & (jm[None] < lens[:, :, None]))
    maskf = valid.astype(jnp.float32)

    # slot bucketing (values beyond the window clamp into the top slot, like the reference)
    tslot = jnp.floor(jnp.clip(td, 0.0, time_window) / time_window
                      * num_slots).astype(jnp.int32)
    dslot = jnp.floor(jnp.clip(ds, 0.0, dist_window) / dist_window
                      * num_slots).astype(jnp.int32)

    # packed selector: sel[b, i, j*2*S1 + s'] = mask * 1{slot(b, i, j) == s'}
    target = jnp.where(sm < S1, tslot, dslot + S1)           # (B, L, K)
    sel = jnp.where(target == sm, maskf, 0.0)                # (B, L, K)

    # ---- one lane-dense contraction: context-sum + slot-weight projection at once ----
    xc = jnp.einsum("blk,bkh->blh", sel, xw,
                    preferred_element_type=jnp.float32)      # (B, L, H)

    # ---- batched (over B) unrolled sigmoid recurrence; h lives in vregs as (B, H) ----
    wh = wh_ref[...]
    h = jnp.zeros((B, H), jnp.float32)
    h_last = jnp.zeros((B, H), jnp.float32)
    for i in range(L):                                       # L is small & static -> unrolled
        h = jax.nn.sigmoid(xc[:, i, :]
                           + jnp.dot(h, wh, preferred_element_type=jnp.float32))
        h_last = jnp.where((lens - 1) == i, h, h_last)       # capture h at step length-1 per row
    # NOTE: if lens[b] == 0, h_last stays zero (torch ref would index step -1); unsupported case.

    # ---- readout MLP: Dropout(eval)=identity -> Linear -> tanh -> Linear; single store ----
    z = jnp.tanh(jnp.dot(h_last, w1_ref[...], preferred_element_type=jnp.float32)
                 + b1_ref[...])
    out_ref[...] = (jnp.dot(z, w2_ref[...], preferred_element_type=jnp.float32)
                    + b2_ref[...])


def strnnm_fused(geo_c, geo_rr, j_map, s_map, lens, xw, wh, w1, b1, w2, b2, *,
                 num_slots, time_window, dist_window):
    B = geo_c.shape[0]
    O = w2.shape[-1]
    kern = functools.partial(_strnnm_kernel, num_slots=num_slots,
                             time_window=float(time_window),
                             dist_window=float(dist_window))
    vmem = pl.BlockSpec(memory_space=pltpu.MemorySpace.VMEM)
    # TODO(synk): at production B, switch to grid=(num_batch_tiles,) with
    # dimension_semantics=("parallel",) so v7x's second TensorCore is used and the unrolled
    # body stays within the 64-vreg budget; grid-less is best at B=2.
    return pl.pallas_call(
        kern,
        out_shape=jax.ShapeDtypeStruct((B, O), jnp.float32),
        in_specs=[vmem] * 11,
        out_specs=vmem,
    )(geo_c, geo_rr, j_map, s_map, lens, xw, wh, w1, b1, w2, b2)


# ----------------------------- model glue (plain JAX) -----------------------------
def init_params(key, vocab, D, H, num_slots, O):
    ks = jax.random.split(key, 6)

    def xavier(k, shape):
        fan_in, fan_out = shape[-2], shape[-1]
        std = (2.0 / (fan_in + fan_out)) ** 0.5
        return std * jax.random.normal(k, shape, jnp.float32)

    return dict(
        embed=0.1 * jax.random.normal(ks[0], (vocab, D), jnp.float32),  # embed_layer table
        time_w=xavier(ks[1], (num_slots + 1, D, H)),
        dist_w=xavier(ks[2], (num_slots + 1, D, H)),
        hidden_w=xavier(ks[3], (H, H)),
        w1=xavier(ks[4], (H, 4 * H)),
        b1=jnp.zeros((1, 4 * H), jnp.float32),
        w2=xavier(ks[5], (4 * H, O)),
        b2=jnp.zeros((1, O), jnp.float32),
    )


def strnnm_forward(params, full_seq, length, timestamp, lat, lng, *,
                   num_slots, time_window, dist_window):
    # embed_layer: plain embedding lookup (data-dependent HBM gather, kept in XLA).
    x = jnp.take(params["embed"], full_seq, axis=0)                       # (B, L, D)
    B, L, D = x.shape
    S1 = num_slots + 1
    S2 = 2 * S1
    K = L * S2
    H = params["hidden_w"].shape[0]

    ts = timestamp.astype(jnp.float32)
    la = lat.astype(jnp.float32)
    lo = lng.astype(jnp.float32)
    geo_c = jnp.stack([ts, la, lo], axis=-1)                              # (B, L, 3)
    geo_r = jnp.stack([ts, la, lo], axis=1)                               # (B, 3, L)
    geo_rr = jnp.repeat(geo_r, S2, axis=-1)                               # (B, 3, K), j-major repeat

    # Pre-stack + pre-scale the slot weight tables; one lane-dense projection for the whole
    # batch replaces 2*(S+1) per-slot matmuls + slot-sum (xw row index = j*S2 + slot).
    w_all = 0.5 * jnp.concatenate([params["time_w"], params["dist_w"]], axis=0)   # (S2, D, H)
    w3p = jnp.transpose(w_all, (1, 0, 2)).reshape(D, S2 * H)              # [d, s'*H + h]
    xw = jnp.dot(x.reshape(B * L, D), w3p).reshape(B, K, H)               # [b, j*S2 + s', h]

    # Static lane -> (source position j, stacked slot s') maps for the packed selector layout.
    lane = jnp.arange(K, dtype=jnp.int32)
    j_map = (lane // S2).reshape(1, K)
    s_map = (lane % S2).reshape(1, K)

    lens = length.astype(jnp.int32).reshape(B, 1)
    return strnnm_fused(geo_c, geo_rr, j_map, s_map, lens, xw,
                        params["hidden_w"], params["w1"], params["b1"],
                        params["w2"], params["b2"],
                        num_slots=num_slots, time_window=time_window,
                        dist_window=dist_window)


if __name__ == "__main__":
    B, L, D, H, O = 2, 8, 16, 32, 8
    num_slots = 4
    time_window = 4.0
    dist_window = 2.0
    vocab = 50

    key = jax.random.PRNGKey(0)
    kp, k1, k2, k3, k4 = jax.random.split(key, 5)
    params = init_params(kp, vocab, D, H, num_slots, O)

    full_seq = jax.random.randint(k1, (B, L), 0, vocab)
    timestamp = jnp.cumsum(jax.random.uniform(k2, (B, L), minval=0.0, maxval=2.0), axis=1)
    lat = jax.random.uniform(k3, (B, L), minval=-1.0, maxval=1.0)
    lng = jax.random.uniform(k4, (B, L), minval=-1.0, maxval=1.0)
    length = jnp.array([L, L - 3], dtype=jnp.int32)

    fwd = jax.jit(functools.partial(strnnm_forward, num_slots=num_slots,
                                    time_window=time_window, dist_window=dist_window))
    out = fwd(params, full_seq, length, timestamp, lat, lng)
    jax.block_until_ready(out)
    assert out.shape == (B, O) and bool(jnp.all(jnp.isfinite(out)))
    print("KERNEL_OK")
</pallas_src>

<mosaic_0001>
module attributes {stable_mosaic.version = 11 : i64} {
  func.func @_strnnm_kernel(%arg0: memref<2x8x3xf32, #tpu.memory_space<vmem>>, %arg1: memref<2x3x80xf32, #tpu.memory_space<vmem>>, %arg2: memref<1x80xi32, #tpu.memory_space<vmem>>, %arg3: memref<1x80xi32, #tpu.memory_space<vmem>>, %arg4: memref<2x1xi32, #tpu.memory_space<vmem>>, %arg5: memref<2x80x32xf32, #tpu.memory_space<vmem>>, %arg6: memref<32x32xf32, #tpu.memory_space<vmem>>, %arg7: memref<32x128xf32, #tpu.memory_space<vmem>>, %arg8: memref<1x128xf32, #tpu.memory_space<vmem>>, %arg9: memref<128x8xf32, #tpu.memory_space<vmem>>, %arg10: memref<1x8xf32, #tpu.memory_space<vmem>>, %arg11: memref<2x8xf32, #tpu.memory_space<vmem>>) attributes {dimension_semantics = [], scalar_prefetch = 0 : i64, scratch_operands = 0 : i64, tpu.core_type = #tpu.core_type<tc>} {
    %c0 = arith.constant 0 : index
    %c0_0 = arith.constant 0 : index
    %c0_1 = arith.constant 0 : index
    %0 = vector.load %arg0[%c0, %c0_0, %c0_1] : memref<2x8x3xf32, #tpu.memory_space<vmem>>, vector<2x8x3xf32>
    %c0_2 = arith.constant 0 : index
    %c0_3 = arith.constant 0 : index
    %c0_4 = arith.constant 0 : index
    %1 = vector.load %arg1[%c0_2, %c0_3, %c0_4] : memref<2x3x80xf32, #tpu.memory_space<vmem>>, vector<2x3x80xf32>
    %c0_5 = arith.constant 0 : index
    %c0_6 = arith.constant 0 : index
    %2 = vector.load %arg2[%c0_5, %c0_6] : memref<1x80xi32, #tpu.memory_space<vmem>>, vector<1x80xi32>
    %c0_7 = arith.constant 0 : index
    %c0_8 = arith.constant 0 : index
    %3 = vector.load %arg3[%c0_7, %c0_8] : memref<1x80xi32, #tpu.memory_space<vmem>>, vector<1x80xi32>
    %c0_9 = arith.constant 0 : index
    %c0_10 = arith.constant 0 : index
    %4 = vector.load %arg4[%c0_9, %c0_10] : memref<2x1xi32, #tpu.memory_space<vmem>>, vector<2x1xi32>
    %c0_11 = arith.constant 0 : index
    %c0_12 = arith.constant 0 : index
    %c0_13 = arith.constant 0 : index
    %5 = vector.load %arg5[%c0_11, %c0_12, %c0_13] : memref<2x80x32xf32, #tpu.memory_space<vmem>>, vector<2x80x32xf32>
    %6 = vector.extract_strided_slice %0 {offsets = [0, 0, 0], sizes = [2, 8, 1], strides = [1, 1, 1]} : vector<2x8x3xf32> to vector<2x8x1xf32>
    %7 = vector.extract_strided_slice %1 {offsets = [0, 0, 0], sizes = [2, 1, 80], strides = [1, 1, 1]} : vector<2x3x80xf32> to vector<2x1x80xf32>
    %8 = vector.broadcast %6 : vector<2x8x1xf32> to vector<2x8x80xf32>
    %9 = vector.broadcast %7 : vector<2x1x80xf32> to vector<2x8x80xf32>
    %10 = arith.subf %8, %9 : vector<2x8x80xf32>
    %11 = vector.extract_strided_slice %0 {offsets = [0, 0, 1], sizes = [2, 8, 1], strides = [1, 1, 1]} : vector<2x8x3xf32> to vector<2x8x1xf32>
    %12 = vector.extract_strided_slice %1 {offsets = [0, 1, 0], sizes = [2, 1, 80], strides = [1, 1, 1]} : vector<2x3x80xf32> to vector<2x1x80xf32>
    %13 = vector.broadcast %11 : vector<2x8x1xf32> to vector<2x8x80xf32>
    %14 = vector.broadcast %12 : vector<2x1x80xf32> to vector<2x8x80xf32>
    %15 = arith.subf %13, %14 : vector<2x8x80xf32>
    %16 = vector.extract_strided_slice %0 {offsets = [0, 0, 2], sizes = [2, 8, 1], strides = [1, 1, 1]} : vector<2x8x3xf32> to vector<2x8x1xf32>
    %17 = vector.extract_strided_slice %1 {offsets = [0, 2, 0], sizes = [2, 1, 80], strides = [1, 1, 1]} : vector<2x3x80xf32> to vector<2x1x80xf32>
    %18 = vector.broadcast %16 : vector<2x8x1xf32> to vector<2x8x80xf32>
    %19 = vector.broadcast %17 : vector<2x1x80xf32> to vector<2x8x80xf32>
    %20 = arith.subf %18, %19 : vector<2x8x80xf32>
    %21 = arith.mulf %15, %15 : vector<2x8x80xf32>
    %22 = arith.mulf %20, %20 : vector<2x8x80xf32>
    %23 = arith.addf %21, %22 : vector<2x8x80xf32>
    %24 = math.sqrt %23 : vector<2x8x80xf32>
    %25 = tpu.iota {dimensions = array<i32: 0>} : vector<8x80xi32>
    %cst = arith.constant 4.000000e+00 : f32
    %26 = vector.broadcast %cst : f32 to vector<2x8x80xf32>
    %27 = arith.cmpf ole, %10, %26 : vector<2x8x80xf32>
    %cst_14 = arith.constant 0.000000e+00 : f32
    %28 = vector.broadcast %cst_14 : f32 to vector<2x8x80xf32>
    %29 = arith.cmpf oge, %10, %28 : vector<2x8x80xf32>
    %30 = arith.andi %27, %29 : vector<2x8x80xi1>
    %31 = vector.broadcast %2 : vector<1x80xi32> to vector<8x80xi32>
    %32 = arith.cmpi sle, %31, %25 : vector<8x80xi32>
    %33 = vector.shape_cast %32 : vector<8x80xi1> to vector<1x8x80xi1>
    %34 = vector.broadcast %33 : vector<1x8x80xi1> to vector<2x8x80xi1>
    %35 = arith.andi %30, %34 : vector<2x8x80xi1>
    %36 = vector.shape_cast %2 : vector<1x80xi32> to vector<1x1x80xi32>
    %37 = vector.shape_cast %4 : vector<2x1xi32> to vector<2x1x1xi32>
    %38 = vector.broadcast %36 : vector<1x1x80xi32> to vector<2x1x80xi32>
    %39 = vector.broadcast %37 : vector<2x1x1xi32> to vector<2x1x80xi32>
    %40 = arith.cmpi slt, %38, %39 : vector<2x1x80xi32>
    %41 = vector.broadcast %40 : vector<2x1x80xi1> to vector<2x8x80xi1>
    %42 = arith.andi %35, %41 : vector<2x8x80xi1>
    %43 = arith.extui %42 : vector<2x8x80xi1> to vector<2x8x80xi32>
    %44 = arith.sitofp %43 : vector<2x8x80xi32> to vector<2x8x80xf32>
    %cst_15 = arith.constant 0.000000e+00 : f32
    %cst_16 = arith.constant 4.000000e+00 : f32
    %45 = vector.broadcast %cst_15 : f32 to vector<2x8x80xf32>
    %46 = arith.maximumf %45, %10 : vector<2x8x80xf32>
    %47 = vector.broadcast %cst_16 : f32 to vector<2x8x80xf32>
    %48 = arith.minimumf %47, %46 : vector<2x8x80xf32>
    %cst_17 = arith.constant 4.000000e+00 : f32
    %49 = vector.broadcast %cst_17 : f32 to vector<2x8x80xf32>
    %50 = arith.divf %48, %49 : vector<2x8x80xf32>
    %cst_18 = arith.constant 4.000000e+00 : f32
    %51 = vector.broadcast %cst_18 : f32 to vector<2x8x80xf32>
    %52 = arith.mulf %50, %51 : vector<2x8x80xf32>
    %53 = math.floor %52 : vector<2x8x80xf32>
    %54 = arith.fptosi %53 : vector<2x8x80xf32> to vector<2x8x80xi32>
    %cst_19 = arith.constant 0.000000e+00 : f32
    %cst_20 = arith.constant 2.000000e+00 : f32
    %55 = vector.broadcast %cst_19 : f32 to vector<2x8x80xf32>
    %56 = arith.maximumf %55, %24 : vector<2x8x80xf32>
    %57 = vector.broadcast %cst_20 : f32 to vector<2x8x80xf32>
    %58 = arith.minimumf %57, %56 : vector<2x8x80xf32>
    %cst_21 = arith.constant 2.000000e+00 : f32
    %59 = vector.broadcast %cst_21 : f32 to vector<2x8x80xf32>
    %60 = arith.divf %58, %59 : vector<2x8x80xf32>
    %cst_22 = arith.constant 4.000000e+00 : f32
    %61 = vector.broadcast %cst_22 : f32 to vector<2x8x80xf32>
    %62 = arith.mulf %60, %61 : vector<2x8x80xf32>
    %63 = math.floor %62 : vector<2x8x80xf32>
    %64 = arith.fptosi %63 : vector<2x8x80xf32> to vector<2x8x80xi32>
    %c5_i32 = arith.constant 5 : i32
    %65 = vector.broadcast %c5_i32 : i32 to vector<1x80xi32>
    %66 = arith.cmpi slt, %3, %65 : vector<1x80xi32>
    %c5_i32_23 = arith.constant 5 : i32
    %67 = vector.broadcast %c5_i32_23 : i32 to vector<2x8x80xi32>
    %68 = arith.addi %64, %67 : vector<2x8x80xi32>
    %69 = vector.shape_cast %66 : vector<1x80xi1> to vector<1x1x80xi1>
    %70 = vector.broadcast %69 : vector<1x1x80xi1> to vector<2x8x80xi1>
    %71 = arith.select %70, %54, %68 : vector<2x8x80xi1>, vector<2x8x80xi32>
    %72 = vector.shape_cast %3 : vector<1x80xi32> to vector<1x1x80xi32>
    %73 = vector.broadcast %72 : vector<1x1x80xi32> to vector<2x8x80xi32>
    %74 = arith.cmpi eq, %71, %73 : vector<2x8x80xi32>
    %cst_24 = arith.constant 0.000000e+00 : f32
    %75 = vector.broadcast %cst_24 : f32 to vector<2x8x80xf32>
    %76 = arith.select %74, %44, %75 : vector<2x8x80xi1>, vector<2x8x80xf32>
    "tpu.trace_start"() <{level = 10 : i32, message = "blk,bkh->blh"}> : () -> ()
    %cst_25 = arith.constant dense<0.000000e+00> : vector<2x8x32xf32>
    %77 = tpu.matmul %76, %5, %cst_25 {dimension_numbers = #tpu.dot_dimension_numbers<[2], [1], [1], [2], [0, 0, 0, 1, 1, 2], [0], [0]>} : vector<2x8x80xf32>, vector<2x80x32xf32>, vector<2x8x32xf32> -> vector<2x8x32xf32>
    "tpu.trace_stop"() : () -> ()
    %c0_26 = arith.constant 0 : index
    %c0_27 = arith.constant 0 : index
    %78 = vector.load %arg6[%c0_26, %c0_27] : memref<32x32xf32, #tpu.memory_space<vmem>>, vector<32x32xf32>
    %cst_28 = arith.constant 0.000000e+00 : f32
    %79 = vector.broadcast %cst_28 : f32 to vector<2x32xf32>
    %cst_29 = arith.constant 0.000000e+00 : f32
    %80 = vector.broadcast %cst_29 : f32 to vector<2x32xf32>
    %81 = vector.extract_strided_slice %77 {offsets = [0, 0, 0], sizes = [2, 1, 32], strides = [1, 1, 1]} : vector<2x8x32xf32> to vector<2x1x32xf32>
    %82 = vector.shape_cast %81 : vector<2x1x32xf32> to vector<2x32xf32>
    %cst_30 = arith.constant dense<0.000000e+00> : vector<2x32xf32>
    %83 = tpu.matmul %79, %78, %cst_30 {dimension_numbers = #tpu.dot_dimension_numbers<[1], [0], [0], [1], [0, 0, 1, 1], [], []>} : vector<2x32xf32>, vector<32x32xf32>, vector<2x32xf32> -> vector<2x32xf32>
    %84 = arith.addf %82, %83 : vector<2x32xf32>
    %85 = arith.negf %84 : vector<2x32xf32>
    %86 = math.exp %85 : vector<2x32xf32>
    %cst_31 = arith.constant 1.000000e+00 : f32
    %87 = vector.broadcast %cst_31 : f32 to vector<2x32xf32>
    %88 = arith.addf %87, %86 : vector<2x32xf32>
    %89 = arith.divf %87, %88 : vector<2x32xf32>
    %c1_i32 = arith.constant 1 : i32
    %90 = vector.broadcast %c1_i32 : i32 to vector<2x1xi32>
    %91 = arith.subi %4, %90 : vector<2x1xi32>
    %c0_i32 = arith.constant 0 : i32
    %92 = vector.broadcast %c0_i32 : i32 to vector<2x1xi32>
    %93 = arith.cmpi eq, %91, %92 : vector<2x1xi32>
    %94 = vector.shape_cast %93 : vector<2x1xi1> to vector<2x1xi1>
    %95 = vector.broadcast %94 : vector<2x1xi1> to vector<2x32xi1>
    %96 = arith.select %95, %89, %80 : vector<2x32xi1>, vector<2x32xf32>
    %97 = vector.extract_strided_slice %77 {offsets = [0, 1, 0], sizes = [2, 1, 32], strides = [1, 1, 1]} : vector<2x8x32xf32> to vector<2x1x32xf32>
    %98 = vector.shape_cast %97 : vector<2x1x32xf32> to vector<2x32xf32>
    %cst_32 = arith.constant dense<0.000000e+00> : vector<2x32xf32>
    %99 = tpu.matmul %89, %78, %cst_32 {dimension_numbers = #tpu.dot_dimension_numbers<[1], [0], [0], [1], [0, 0, 1, 1], [], []>} : vector<2x32xf32>, vector<32x32xf32>, vector<2x32xf32> -> vector<2x32xf32>
    %100 = arith.addf %98, %99 : vector<2x32xf32>
    %101 = arith.negf %100 : vector<2x32xf32>
    %102 = math.exp %101 : vector<2x32xf32>
    %cst_33 = arith.constant 1.000000e+00 : f32
    %103 = vector.broadcast %cst_33 : f32 to vector<2x32xf32>
    %104 = arith.addf %103, %102 : vector<2x32xf32>
    %105 = arith.divf %103, %104 : vector<2x32xf32>
    %c1_i32_34 = arith.constant 1 : i32
    %106 = vector.broadcast %c1_i32_34 : i32 to vector<2x1xi32>
    %107 = arith.subi %4, %106 : vector<2x1xi32>
    %c1_i32_35 = arith.constant 1 : i32
    %108 = vector.broadcast %c1_i32_35 : i32 to vector<2x1xi32>
    %109 = arith.cmpi eq, %107, %108 : vector<2x1xi32>
    %110 = vector.shape_cast %109 : vector<2x1xi1> to vector<2x1xi1>
    %111 = vector.broadcast %110 : vector<2x1xi1> to vector<2x32xi1>
    %112 = arith.select %111, %105, %96 : vector<2x32xi1>, vector<2x32xf32>
    %113 = vector.extract_strided_slice %77 {offsets = [0, 2, 0], sizes = [2, 1, 32], strides = [1, 1, 1]} : vector<2x8x32xf32> to vector<2x1x32xf32>
    %114 = vector.shape_cast %113 : vector<2x1x32xf32> to vector<2x32xf32>
    %cst_36 = arith.constant dense<0.000000e+00> : vector<2x32xf32>
    %115 = tpu.matmul %105, %78, %cst_36 {dimension_numbers = #tpu.dot_dimension_numbers<[1], [0], [0], [1], [0, 0, 1, 1], [], []>} : vector<2x32xf32>, vector<32x32xf32>, vector<2x32xf32> -> vector<2x32xf32>
    %116 = arith.addf %114, %115 : vector<2x32xf32>
    %117 = arith.negf %116 : vector<2x32xf32>
    %118 = math.exp %117 : vector<2x32xf32>
    %cst_37 = arith.constant 1.000000e+00 : f32
    %119 = vector.broadcast %cst_37 : f32 to vector<2x32xf32>
    %120 = arith.addf %119, %118 : vector<2x32xf32>
    %121 = arith.divf %119, %120 : vector<2x32xf32>
    %c1_i32_38 = arith.constant 1 : i32
    %122 = vector.broadcast %c1_i32_38 : i32 to vector<2x1xi32>
    %123 = arith.subi %4, %122 : vector<2x1xi32>
    %c2_i32 = arith.constant 2 : i32
    %124 = vector.broadcast %c2_i32 : i32 to vector<2x1xi32>
    %125 = arith.cmpi eq, %123, %124 : vector<2x1xi32>
    %126 = vector.shape_cast %125 : vector<2x1xi1> to vector<2x1xi1>
    %127 = vector.broadcast %126 : vector<2x1xi1> to vector<2x32xi1>
    %128 = arith.select %127, %121, %112 : vector<2x32xi1>, vector<2x32xf32>
    %129 = vector.extract_strided_slice %77 {offsets = [0, 3, 0], sizes = [2, 1, 32], strides = [1, 1, 1]} : vector<2x8x32xf32> to vector<2x1x32xf32>
    %130 = vector.shape_cast %129 : vector<2x1x32xf32> to vector<2x32xf32>
    %cst_39 = arith.constant dense<0.000000e+00> : vector<2x32xf32>
    %131 = tpu.matmul %121, %78, %cst_39 {dimension_numbers = #tpu.dot_dimension_numbers<[1], [0], [0], [1], [0, 0, 1, 1], [], []>} : vector<2x32xf32>, vector<32x32xf32>, vector<2x32xf32> -> vector<2x32xf32>
    %132 = arith.addf %130, %131 : vector<2x32xf32>
    %133 = arith.negf %132 : vector<2x32xf32>
    %134 = math.exp %133 : vector<2x32xf32>
    %cst_40 = arith.constant 1.000000e+00 : f32
    %135 = vector.broadcast %cst_40 : f32 to vector<2x32xf32>
    %136 = arith.addf %135, %134 : vector<2x32xf32>
    %137 = arith.divf %135, %136 : vector<2x32xf32>
    %c1_i32_41 = arith.constant 1 : i32
    %138 = vector.broadcast %c1_i32_41 : i32 to vector<2x1xi32>
    %139 = arith.subi %4, %138 : vector<2x1xi32>
    %c3_i32 = arith.constant 3 : i32
    %140 = vector.broadcast %c3_i32 : i32 to vector<2x1xi32>
    %141 = arith.cmpi eq, %139, %140 : vector<2x1xi32>
    %142 = vector.shape_cast %141 : vector<2x1xi1> to vector<2x1xi1>
    %143 = vector.broadcast %142 : vector<2x1xi1> to vector<2x32xi1>
    %144 = arith.select %143, %137, %128 : vector<2x32xi1>, vector<2x32xf32>
    %145 = vector.extract_strided_slice %77 {offsets = [0, 4, 0], sizes = [2, 1, 32], strides = [1, 1, 1]} : vector<2x8x32xf32> to vector<2x1x32xf32>
    %146 = vector.shape_cast %145 : vector<2x1x32xf32> to vector<2x32xf32>
    %cst_42 = arith.constant dense<0.000000e+00> : vector<2x32xf32>
    %147 = tpu.matmul %137, %78, %cst_42 {dimension_numbers = #tpu.dot_dimension_numbers<[1], [0], [0], [1], [0, 0, 1, 1], [], []>} : vector<2x32xf32>, vector<32x32xf32>, vector<2x32xf32> -> vector<2x32xf32>
    %148 = arith.addf %146, %147 : vector<2x32xf32>
    %149 = arith.negf %148 : vector<2x32xf32>
    %150 = math.exp %149 : vector<2x32xf32>
    %cst_43 = arith.constant 1.000000e+00 : f32
    %151 = vector.broadcast %cst_43 : f32 to vector<2x32xf32>
    %152 = arith.addf %151, %150 : vector<2x32xf32>
    %153 = arith.divf %151, %152 : vector<2x32xf32>
    %c1_i32_44 = arith.constant 1 : i32
    %154 = vector.broadcast %c1_i32_44 : i32 to vector<2x1xi32>
    %155 = arith.subi %4, %154 : vector<2x1xi32>
    %c4_i32 = arith.constant 4 : i32
    %156 = vector.broadcast %c4_i32 : i32 to vector<2x1xi32>
    %157 = arith.cmpi eq, %155, %156 : vector<2x1xi32>
    %158 = vector.shape_cast %157 : vector<2x1xi1> to vector<2x1xi1>
    %159 = vector.broadcast %158 : vector<2x1xi1> to vector<2x32xi1>
    %160 = arith.select %159, %153, %144 : vector<2x32xi1>, vector<2x32xf32>
    %161 = vector.extract_strided_slice %77 {offsets = [0, 5, 0], sizes = [2, 1, 32], strides = [1, 1, 1]} : vector<2x8x32xf32> to vector<2x1x32xf32>
    %162 = vector.shape_cast %161 : vector<2x1x32xf32> to vector<2x32xf32>
    %cst_45 = arith.constant dense<0.000000e+00> : vector<2x32xf32>
    %163 = tpu.matmul %153, %78, %cst_45 {dimension_numbers = #tpu.dot_dimension_numbers<[1], [0], [0], [1], [0, 0, 1, 1], [], []>} : vector<2x32xf32>, vector<32x32xf32>, vector<2x32xf32> -> vector<2x32xf32>
    %164 = arith.addf %162, %163 : vector<2x32xf32>
    %165 = arith.negf %164 : vector<2x32xf32>
    %166 = math.exp %165 : vector<2x32xf32>
    %cst_46 = arith.constant 1.000000e+00 : f32
    %167 = vector.broadcast %cst_46 : f32 to vector<2x32xf32>
    %168 = arith.addf %167, %166 : vector<2x32xf32>
    %169 = arith.divf %167, %168 : vector<2x32xf32>
    %c1_i32_47 = arith.constant 1 : i32
    %170 = vector.broadcast %c1_i32_47 : i32 to vector<2x1xi32>
    %171 = arith.subi %4, %170 : vector<2x1xi32>
    %c5_i32_48 = arith.constant 5 : i32
    %172 = vector.broadcast %c5_i32_48 : i32 to vector<2x1xi32>
    %173 = arith.cmpi eq, %171, %172 : vector<2x1xi32>
    %174 = vector.shape_cast %173 : vector<2x1xi1> to vector<2x1xi1>
    %175 = vector.broadcast %174 : vector<2x1xi1> to vector<2x32xi1>
    %176 = arith.select %175, %169, %160 : vector<2x32xi1>, vector<2x32xf32>
    %177 = vector.extract_strided_slice %77 {offsets = [0, 6, 0], sizes = [2, 1, 32], strides = [1, 1, 1]} : vector<2x8x32xf32> to vector<2x1x32xf32>
    %178 = vector.shape_cast %177 : vector<2x1x32xf32> to vector<2x32xf32>
    %cst_49 = arith.constant dense<0.000000e+00> : vector<2x32xf32>
    %179 = tpu.matmul %169, %78, %cst_49 {dimension_numbers = #tpu.dot_dimension_numbers<[1], [0], [0], [1], [0, 0, 1, 1], [], []>} : vector<2x32xf32>, vector<32x32xf32>, vector<2x32xf32> -> vector<2x32xf32>
    %180 = arith.addf %178, %179 : vector<2x32xf32>
    %181 = arith.negf %180 : vector<2x32xf32>
    %182 = math.exp %181 : vector<2x32xf32>
    %cst_50 = arith.constant 1.000000e+00 : f32
    %183 = vector.broadcast %cst_50 : f32 to vector<2x32xf32>
    %184 = arith.addf %183, %182 : vector<2x32xf32>
    %185 = arith.divf %183, %184 : vector<2x32xf32>
    %c1_i32_51 = arith.constant 1 : i32
    %186 = vector.broadcast %c1_i32_51 : i32 to vector<2x1xi32>
    %187 = arith.subi %4, %186 : vector<2x1xi32>
    %c6_i32 = arith.constant 6 : i32
    %188 = vector.broadcast %c6_i32 : i32 to vector<2x1xi32>
    %189 = arith.cmpi eq, %187, %188 : vector<2x1xi32>
    %190 = vector.shape_cast %189 : vector<2x1xi1> to vector<2x1xi1>
    %191 = vector.broadcast %190 : vector<2x1xi1> to vector<2x32xi1>
    %192 = arith.select %191, %185, %176 : vector<2x32xi1>, vector<2x32xf32>
    %193 = vector.extract_strided_slice %77 {offsets = [0, 7, 0], sizes = [2, 1, 32], strides = [1, 1, 1]} : vector<2x8x32xf32> to vector<2x1x32xf32>
    %194 = vector.shape_cast %193 : vector<2x1x32xf32> to vector<2x32xf32>
    %cst_52 = arith.constant dense<0.000000e+00> : vector<2x32xf32>
    %195 = tpu.matmul %185, %78, %cst_52 {dimension_numbers = #tpu.dot_dimension_numbers<[1], [0], [0], [1], [0, 0, 1, 1], [], []>} : vector<2x32xf32>, vector<32x32xf32>, vector<2x32xf32> -> vector<2x32xf32>
    %196 = arith.addf %194, %195 : vector<2x32xf32>
    %197 = arith.negf %196 : vector<2x32xf32>
    %198 = math.exp %197 : vector<2x32xf32>
    %cst_53 = arith.constant 1.000000e+00 : f32
    %199 = vector.broadcast %cst_53 : f32 to vector<2x32xf32>
    %200 = arith.addf %199, %198 : vector<2x32xf32>
    %201 = arith.divf %199, %200 : vector<2x32xf32>
    %c1_i32_54 = arith.constant 1 : i32
    %202 = vector.broadcast %c1_i32_54 : i32 to vector<2x1xi32>
    %203 = arith.subi %4, %202 : vector<2x1xi32>
    %c7_i32 = arith.constant 7 : i32
    %204 = vector.broadcast %c7_i32 : i32 to vector<2x1xi32>
    %205 = arith.cmpi eq, %203, %204 : vector<2x1xi32>
    %206 = vector.shape_cast %205 : vector<2x1xi1> to vector<2x1xi1>
    %207 = vector.broadcast %206 : vector<2x1xi1> to vector<2x32xi1>
    %208 = arith.select %207, %201, %192 : vector<2x32xi1>, vector<2x32xf32>
    %c0_55 = arith.constant 0 : index
    %c0_56 = arith.constant 0 : index
    %209 = vector.load %arg7[%c0_55, %c0_56] : memref<32x128xf32, #tpu.memory_space<vmem>>, vector<32x128xf32>
    %cst_57 = arith.constant dense<0.000000e+00> : vector<2x128xf32>
    %210 = tpu.matmul %208, %209, %cst_57 {dimension_numbers = #tpu.dot_dimension_numbers<[1], [0], [0], [1], [0, 0, 1, 1], [], []>} : vector<2x32xf32>, vector<32x128xf32>, vector<2x128xf32> -> vector<2x128xf32>
    %c0_58 = arith.constant 0 : index
    %c0_59 = arith.constant 0 : index
    %211 = vector.load %arg8[%c0_58, %c0_59] : memref<1x128xf32, #tpu.memory_space<vmem>>, vector<1x128xf32>
    %212 = vector.broadcast %211 : vector<1x128xf32> to vector<2x128xf32>
    %213 = arith.addf %210, %212 : vector<2x128xf32>
    %214 = math.tanh %213 : vector<2x128xf32>
    %c0_60 = arith.constant 0 : index
    %c0_61 = arith.constant 0 : index
    %215 = vector.load %arg9[%c0_60, %c0_61] : memref<128x8xf32, #tpu.memory_space<vmem>>, vector<128x8xf32>
    %cst_62 = arith.constant dense<0.000000e+00> : vector<2x8xf32>
    %216 = tpu.matmul %214, %215, %cst_62 {dimension_numbers = #tpu.dot_dimension_numbers<[1], [0], [0], [1], [0, 0, 1, 1], [], []>} : vector<2x128xf32>, vector<128x8xf32>, vector<2x8xf32> -> vector<2x8xf32>
    %c0_63 = arith.constant 0 : index
    %c0_64 = arith.constant 0 : index
    %217 = vector.load %arg10[%c0_63, %c0_64] : memref<1x8xf32, #tpu.memory_space<vmem>>, vector<1x8xf32>
    %218 = vector.broadcast %217 : vector<1x8xf32> to vector<2x8xf32>
    %219 = arith.addf %216, %218 : vector<2x8xf32>
    %c0_65 = arith.constant 0 : index
    %c0_66 = arith.constant 0 : index
    %220 = vector.load %arg11[%c0_65, %c0_66] : memref<2x8xf32, #tpu.memory_space<vmem>>, vector<2x8xf32>
    tpu.vector_store %arg11[%c0_65, %c0_66], %219 {strides = array<i32>} : memref<2x8xf32, #tpu.memory_space<vmem>>, vector<2x8xf32>,
    return
  }
}

</mosaic_0001>

<bundles_post_ra>
// kernel: strnnm_forward.1
= control target key start
LH: loop header
LB: loop body
LE: loop exit
PB: predicated region body
PF: predicated region fallthrough
CT: control target
= control target key end

     0   :  { %v76_v2 = vlaneseq  ;;  %v1845_v3 = vmov 1   ;;  %v1846_v5 = vmov 1966171168   ;;  %s2300_s0 = inlined_call_operand.vmem [shape: f32[2,8,3], index: 0, kind: input, shape index: {}]   ;;  %s2301_s1 = inlined_call_operand.vmem [shape: f32[2,3,80], index: 1, kind: input, shape index: {}]   ;;  %s2302_s2 = inlined_call_operand.vmem [shape: s32[1,80], index: 2, kind: input, shape index: {}]   ;;  %s2303_s3 = inlined_call_operand.vmem [shape: s32[1,80], index: 3, kind: input, shape index: {}]   ;;  %s2304_s4 = inlined_call_operand.vmem [shape: s32[2,1], index: 4, kind: input, shape index: {}]   ;;  %s2305_s5 = inlined_call_operand.vmem [shape: f32[2,80,32], index: 5, kind: input, shape index: {}]   ;;  %s2306_s6 = inlined_call_operand.vmem [shape: f32[32,32], index: 6, kind: input, shape index: {}]   ;;  %s2307_s7 = inlined_call_operand.vmem [shape: f32[32,128], index: 7, kind: input, shape index: {}]   ;;  %s2308_s8 = inlined_call_operand.vmem [shape: f32[1,128], index: 8, kind: input, shape index: {}]   ;;  %s2309_s9 = inlined_call_operand.vmem [shape: f32[128,8], index: 9, kind: input, shape index: {}]   ;;  %s2310_s10 = inlined_call_operand.vmem [shape: f32[1,8], index: 10, kind: input, shape index: {}]   ;;  %s2311_s11 = inlined_call_operand.hbm [shape: f32[2,8], index: 11, kind: output, shape index: {}]  }
   0x1   :  { %v40_v0 = vld [vmem:[%s2300_s0 + $0x8] sm:$0xff]  ;;  %v39_v1 = vld [vmem:[%s2300_s0] sm:$0xff]  ;;  %1749 = vset.pattern.permute.xlu1 %v1845_v3  ;;  %1747 = vset.pattern.permute.xlu0 %v1845_v3  ;;  %v160_v6 = vunpack.c.l.s4 %v1846_v5 }
   0x2   :  { %91 = vperm.xlu1 %1749, %v40_v0   ;;  %87 = vperm.xlu0 %1747, %v39_v1   ;;  %v1918_v4 = vshrl.u32 %v76_v2, 7 }
   0x3   :  { %16 = vsyncpa [#allocation3], 0  ;;  %v161_v7 = vunpack.c.0.s8 %v160_v6  ;;  %v45_v8 = vld [vmem:[%s2304_s4] sm:$0x3]  ;;  %v1847_v9 = vmov 2   ;;  %v1848_v13 = vmov 0  }
   0x4   :  { %v1443_v12 = vadd.s32 4294967295, %v45_v8  ;;  %v55_v21 = vld [vmem:[%s2305_s5 + $0x48] sm:$0xff]  ;;  %v65_v22 = vld [vmem:[%s2305_s5 + $0x98] sm:$0xff]  ;;  %v1849_v25 = vmov 0.0   ;;  %v54_v26 = vld [vmem:[%s2305_s5 + $0x40] sm:$0xff]  ;;  %vm1850_vm8 = vmmov 0  }
   0x5   :  { %v164_v10 = vsub.s32 %v161_v7, %v1918_v4  ;;  %1552 = vmatprep.subr.mxu0 %v1849_v25  ;;  %1575 = vmatprep.subr.mxu1 %v1849_v25  ;;  %v64_v27 = vld [vmem:[%s2305_s5 + $0x90] sm:$0xff]  ;;  %v53_v28 = vld [vmem:[%s2305_s5 + $0x38] sm:$0xff]  ;;  %v63_v30 = vld [vmem:[%s2305_s5 + $0x88] sm:$0xff]  ;;  %v96_v47 = vsub.s32 1, %v1918_v4  ;;  %v114_v50 = vsub.s32 2, %v1918_v4  ;;  %v2029_v60 = vsub.s32 0, %v1918_v4 }
   0x6   :  { %1750 = vset.pattern.permute.xlu1 %v1847_v9  ;;  %1748 = vset.pattern.permute.xlu0 %v1847_v9  ;;  %vm504_vm0 = vcmp.eq.s32.totalorder %v1443_v12, 0  ;;  %vm710_vm1 = vcmp.eq.s32.totalorder %v1443_v12, 2  ;;  %vm607_vm2 = vcmp.eq.s32.totalorder %v1443_v12, 1  ;;  %vm918_vm3 = vcmp.eq.s32.totalorder %v1443_v12, 4  ;;  %v52_v31 = vld [vmem:[%s2305_s5 + $0x30] sm:$0xff]  ;;  %v62_v32 = vld [vmem:[%s2305_s5 + $0x80] sm:$0xff] }
   0x7   :  { %109 = vperm.xlu1 %1750, %v40_v0   ;;  %105 = vperm.xlu0 %1748, %v39_v1   ;;  %v165_v11 = vrot.slane %v45_v8, %v164_v10  ;;  %v505_v16 = vsel %vm504_vm0, 1, %v1848_v13  ;;  %v711_v18 = vsel %vm710_vm1, 1, %v1848_v13  ;;  %v608_v19 = vsel %vm607_vm2, 1, %v1848_v13  ;;  %v51_v33 = vld [vmem:[%s2305_s5 + $0x28] sm:$0xff]  ;;  %v61_v35 = vld [vmem:[%s2305_s5 + $0x78] sm:$0xff]  ;;  %v50_v36 = vld [vmem:[%s2305_s5 + $0x20] sm:$0xff] }
   0x8   :  { %v919_v20 = vsel %vm918_vm3, 1, %v1848_v13  ;;  %vm814_vm4 = vcmp.eq.s32.totalorder %v1443_v12, 3  ;;  %vm1126_vm5 = vcmp.eq.s32.totalorder %v1443_v12, 6  ;;  %vm1022_vm6 = vcmp.eq.s32.totalorder %v1443_v12, 5  ;;  %1553 = vmatpush3.msra.mxu0 %v55_v21  ;;  %1576 = vmatpush3.msra.mxu1 %v65_v22  ;;  %v60_v37 = vld [vmem:[%s2305_s5 + $0x70] sm:$0xff]  ;;  %v49_v38 = vld [vmem:[%s2305_s5 + $0x18] sm:$0xff] }
   0x9   :  { %v173_v14 = vrot.slane %v165_v11, %v164_v10  ;;  %v166_v15 = vcombine.high %v165_v11, %v165_v11  ;;  %v815_v23 = vsel %vm814_vm4, 1, %v1848_v13  ;;  %v1127_v24 = vsel %vm1126_vm5, 1, %v1848_v13  ;;  %1554 = vmatprep.subr.mxu0 %v1849_v25  ;;  %1577 = vmatprep.subr.mxu1 %v1849_v25  ;;  %v59_v39 = vld [vmem:[%s2305_s5 + $0x68] sm:$0xff]  ;;  %v48_v40 = vld [vmem:[%s2305_s5 + $0x10] sm:$0xff]  ;;  %v58_v41 = vld [vmem:[%s2305_s5 + $0x60] sm:$0xff]  ;;  %s1851_s23 = smov [#allocation2]  }
   0xa   :  { %v1023_v29 = vsel %vm1022_vm6, 1, %v1848_v13  ;;  %1555 = vmatpush3.msra.mxu0 %v54_v26  ;;  %1578 = vmatpush3.msra.mxu1 %v64_v27  ;;  %vm1230_vm7 = vcmp.eq.s32.totalorder %v1443_v12, 7  ;;  %v47_v42 = vld [vmem:[%s2305_s5 + $0x8] sm:$0xff]  ;;  %v57_v43 = vld [vmem:[%s2305_s5 + $0x58] sm:$0xff]  ;;  %v46_v44 = vld [vmem:[%s2305_s5] sm:$0xff] }
   0xb   :  { %1751 = vset.pattern.permute.xlu1 %v1848_v13  ;;  %1752 = vset.pattern.permute.xlu0 %v1848_v13  ;;  %v180_v17 = vrot.slane %v166_v15, %v164_v10  ;;  %v1231_v34 = vsel %vm1230_vm7, 1, %v1848_v13  ;;  %v56_v45 = vld [vmem:[%s2305_s5 + $0x50] sm:$0xff]  ;;  %v42_v46 = vld [vmem:[%s2301_s1 + $0x4] sm:$0x7]  ;;  %v41_v48 = vld [vmem:[%s2301_s1] sm:$0x7] }
   0xc   :  { %68 = vperm.xlu1 %1751, %v39_v1   ;;  %73 = vperm.xlu0 %1752, %v40_v0   ;;  %v101_v49 = vrot.slane %v42_v46, %v96_v47  ;;  %v97_v51 = vrot.slane %v41_v48, %v96_v47  ;;  %v119_v55 = vrot.slane %v42_v46, %v114_v50 }
   0xd   :  { %1556 = vmatprep.subr.mxu0 %v1849_v25  ;;  %1579 = vmatprep.subr.mxu1 %v1849_v25  ;;  %v115_v56 = vrot.slane %v41_v48, %v114_v50  ;;  %v83_v6 = vrot.slane %v42_v46, %v2029_v60  ;;  %v79_v7 = vrot.slane %v41_v48, %v2029_v60 }
   0xe   :  { %1557 = vmatpush3.msra.mxu0 %v53_v28  ;;  %1580 = vmatpush3.msra.mxu1 %v63_v30 }
   0xf   :  { %1558 = vmatprep.subr.mxu0 %v1849_v25  ;;  %1581 = vmatprep.subr.mxu1 %v1849_v25 }
  0x10   :  { %182 = vperm.xlu1 %1751, %v173_v14   ;;  %507 = vperm.xlu0 %1752, %v505_v16  }
  0x11   :  { %1559 = vmatpush3.msra.mxu0 %v52_v31  ;;  %1582 = vmatpush3.msra.mxu1 %v62_v32  ;;  %v43_v31 = vld [vmem:[%s2302_s2] sm:$0x1] }
  0x12   :  { %1560 = vmatprep.subr.mxu0 %v1849_v25  ;;  %1583 = vmatprep.subr.mxu1 %v1849_v25 }
  0x13   :  { %1561 = vmatpush3.msra.mxu0 %v51_v33  ;;  %1584 = vmatpush3.msra.mxu1 %v61_v35  ;;  %v44_v35 = vld [vmem:[%s2303_s3] sm:$0x1] }
  0x14   :  { %189 = vperm.xlu1 %1751, %v180_v17   ;;  %713 = vperm.xlu0 %1752, %v711_v18   ;;  %vm241_vm15 = vcmp.lt.s32.totalorder %v44_v35, 5 }
  0x15   :  { %1562 = vmatprep.subr.mxu0 %v1849_v25  ;;  %1585 = vmatprep.subr.mxu1 %v1849_v25 }
  0x16   :  { %1563 = vmatpush3.msra.mxu0 %v50_v36  ;;  %1586 = vmatpush3.msra.mxu1 %v60_v37 }
  0x17   :  { %1564 = vmatprep.subr.mxu0 %v1849_v25  ;;  %1587 = vmatprep.subr.mxu1 %v1849_v25 }
  0x18   :  { %610 = vperm.xlu1 %1751, %v608_v19   ;;  %921 = vperm.xlu0 %1752, %v919_v20  }
  0x19   :  { %1565 = vmatpush3.msra.mxu0 %v49_v38  ;;  %1588 = vmatpush3.msra.mxu1 %v59_v39 }
  0x1a   :  { %1566 = vmatprep.subr.mxu0 %v1849_v25  ;;  %1589 = vmatprep.subr.mxu1 %v1849_v25 }
  0x1b   :  { %1567 = vmatpush3.msra.mxu0 %v48_v40  ;;  %1590 = vmatpush3.msra.mxu1 %v58_v41  ;;  %v153_v41 = vrot.slane %v43_v31, %v2029_v60 }
  0x1c   :  { %817 = vperm.xlu1 %1751, %v815_v23   ;;  %1129 = vperm.xlu0 %1752, %v1127_v24  }
  0x1d   :  { %1568 = vmatprep.subr.mxu0 %v1849_v25  ;;  %1591 = vmatprep.subr.mxu1 %v1849_v25  ;;  %vm2056_vm6 = vcmp.le.s32.totalorder %v153_v41, %v1918_v4 }
  0x1e   :  { %1569 = vmatpush3.msra.mxu0 %v47_v42  ;;  %1592 = vmatpush3.msra.mxu1 %v57_v43 }
  0x1f   :  { %1570 = vmatprep.subr.mxu0 %v1849_v25  ;;  %1593 = vmatprep.subr.mxu1 %v1849_v25 }
  0x20   :  { %1025 = vperm.xlu1 %1751, %v1023_v29   ;;  %1571 = vmatpush3.msra.mxu0 %v46_v44 }
  0x21   :  { %1572 = vmatprep.mubr.msk.f32.mxu0 %vm1850_vm8, %v1849_v25  ;;  %1594 = vmatpush3.msra.mxu1 %v56_v45 }
  0x22   :  { %1595 = vmatprep.mubr.msk.f32.mxu1 %vm1850_vm8, %v1849_v25  ;;  %1598 = vmatprep.subr.mxu0 %v1849_v25 }
  0x23   :  { %1631 = vmatprep.subr.mxu1 %v1849_v25 }
  0x24   :  { %1233 = vperm.xlu1 %1751, %v1231_v34  }
  0x7d   :  { %v88_v52 = vpop.permute.xlu0 %87  ;;  %v92_v53 = vpop.permute.xlu1 %91 }
  0x7e   :  { %v103_v54 = vsub.f32 %v92_v53, %v101_v49  ;;  %v102_v57 = vsub.f32 %v88_v52, %v97_v51  ;;  %v244_v49 = vsel %vm241_vm15, 1, %v1848_v13  ;;  %vm260_vm15 = vcmask 654336  }
  0x80   :  { %v123_v61 = vmul.f32 %v103_v54, %v103_v54  ;;  %v122_v0 = vmul.f32 %v102_v57, %v102_v57 }
  0x82   :  { %v110_v58 = vpop.permute.xlu1 %109  ;;  %v106_v59 = vpop.permute.xlu0 %105 }
  0x83   :  { %v121_v62 = vsub.f32 %v110_v58, %v119_v55  ;;  %v120_v63 = vsub.f32 %v106_v59, %v115_v56 }
  0x85   :  { %v125_v1 = vmul.f32 %v121_v62, %v121_v62  ;;  %v124_v2 = vmul.f32 %v120_v63, %v120_v63 }
  0x87   :  { %v127_v3 = vadd.f32 %v125_v1, %v123_v61  ;;  %v126_v5 = vadd.f32 %v124_v2, %v122_v0  ;;  %v74_v8 = vpop.permute.xlu0 %73  ;;  %v69_v9 = vpop.permute.xlu1 %68  ;;  %v248_v61 = vrot.slane %v244_v49, %v2029_v60 }
  0x88   :  { %v85_v10 = vsub.f32 %v74_v8, %v83_v6  ;;  %v84_v11 = vsub.f32 %v69_v9, %v79_v7 }
  0x89   :  { %1753 = vrsqrt.f32 %v127_v3  ;;  %vm130_vm9 = vcmp.eq.f32.partialorder %v126_v5, inf  ;;  %vm137_vm10 = vcmp.eq.f32.partialorder %v127_v3, inf  ;;  %v140_v27 = vand.u32 2147483648, %v127_v3 }
  0x8a   :  { %1755 = vrsqrt.f32 %v126_v5  ;;  %v216_v12 = vmax.f32 %v85_v10, 0.0  ;;  %v215_v14 = vmax.f32 %v84_v11, 0.0  ;;  %v133_v29 = vand.u32 2147483648, %v126_v5 }
  0x8b   :  { %v183_v15 = vpop.permute.xlu1 %182  ;;  %vm139_vm11 = vcmp.eq.f32.partialorder %v127_v3, 0.0  ;;  %vm132_vm12 = vcmp.eq.f32.partialorder %v126_v5, 0.0  ;;  %vm145_vm0 = vcmp.le.f32.partialorder %v85_v10, 4.0  ;;  %vm147_vm1 = vcmp.ge.f32.partialorder %v85_v10, 0.0  ;;  %v508_v49 = vpop.permute.xlu0 %507 }
  0x8c   :  { %v218_v16 = vmin.f32 %v216_v12, 4.0  ;;  %v217_v17 = vmin.f32 %v215_v14, 4.0  ;;  %v187_v28 = vrot.slane %v183_v15, %v2029_v60  ;;  %vm144_vm2 = vcmp.le.f32.partialorder %v84_v11, 4.0  ;;  %vm2047_vm4 = vmand %vm145_vm0, %vm147_vm1  ;;  %v2075_v12 = vld [vmem:[%s2306_s6 + $0x18] sm:$0xff]  ;;  %v2080_v14 = vld [vmem:[%s2306_s6 + $0x10] sm:$0xff] }
  0x8d   :  { %vm146_vm3 = vcmp.ge.f32.partialorder %v84_v11, 0.0  ;;  %v2090_v15 = vld [vmem:[%s2306_s6 + $0x8] sm:$0xff] }
  0x8e   :  { %v221_v21 = vmul.f32 0.25, %v218_v16  ;;  %v220_v23 = vmul.f32 0.25, %v217_v17  ;;  %vm195_vm14 = vcmp.lt.s32.totalorder %v43_v31, %v187_v28  ;;  %vm2051_vm5 = vmand %vm144_vm2, %vm146_vm3  ;;  %v2099_v16 = vld [vmem:[%s2306_s6] sm:$0xff]  ;;  %vm513_vm2 = vcmask 1041409  }
  0x8f   :  { %v190_v20 = vpop.permute.xlu1 %189  ;;  %v197_v47 = vsel %vm195_vm14, 1, %v1848_v13  ;;  %vm411_vm3 = vcmask 261120  }
  0x90   :  { %v194_v24 = vrot.slane %v190_v20, %v2029_v60  ;;  %v223_v34 = vmul.f32 4.0, %v221_v21  ;;  %v222_v38 = vmul.f32 4.0, %v220_v23  ;;  %v202_v53 = vrot.slane %v197_v47, %v2029_v60 }
  0x92   :  { %vm196_vm13 = vcmp.lt.s32.totalorder %v43_v31, %v194_v24  ;;  %v225_v44 = vfloor.f32 %v223_v34  ;;  %v224_v46 = vfloor.f32 %v222_v38 }
  0x93   :  { %v198_v43 = vsel %vm196_vm13, 1, %v1848_v13 }
  0x94   :  { %v206_v51 = vrot.slane %v198_v43, %v2029_v60  ;;  %v1734_v55 = vtrunc.f32 %v225_v44  ;;  %v1732_v58 = vtrunc.f32 %v224_v46 }
  0x96   :  { %v1754_v18 = vpop.eup %1753  ;;  %vm208_vm7 = vcmp.eq.s32.totalorder %v206_v51, 1  ;;  %v1735_v0 = vcvt.f32.s32 %v1734_v55  ;;  %v1733_v1 = vcvt.f32.s32 %v1732_v58 }
  0x97   :  { %v1756_v19 = vpop.eup %1755  ;;  %v136_v22 = vmul.f32 %v1754_v18, %v127_v3 }
  0x98   :  { %v129_v26 = vmul.f32 %v1756_v19, %v126_v5 }
  0x99   :  { %v138_v30 = vsel %vm137_vm10, %v127_v3, %v136_v22  ;;  %vm207_vm10 = vcmp.eq.s32.totalorder %v202_v53, 1  ;;  %v255_v3 = vrot.slane %v44_v35, %v2029_v60 }
  0x9a   :  { %v131_v32 = vsel %vm130_vm9, %v126_v5, %v129_v26  ;;  %v141_v33 = vsel %vm139_vm11, %v140_v27, %v138_v30  ;;  %vm158_vm9 = vmand %vm2047_vm4, %vm2056_vm6  ;;  %vm509_vm4 = vcmp.eq.s32.totalorder %v508_v49, 1 }
  0x9b   :  { %v134_v36 = vsel %vm132_vm12, %v133_v29, %v131_v32  ;;  %v229_v37 = vmax.f32 %v141_v33, 0.0  ;;  %vm157_vm11 = vmand %vm2051_vm5, %vm2056_vm6  ;;  %vm249_vm12 = vcmp.eq.s32.totalorder %v248_v61, 1 }
  0x9c   :  { %v228_v39 = vmax.f32 %v134_v36, 0.0  ;;  %vm210_vm13 = vmand %vm158_vm9, %vm208_vm7 }
  0x9d   :  { %v231_v40 = vmin.f32 %v229_v37, 2.0  ;;  %vm209_vm14 = vmand %vm157_vm11, %vm207_vm10  ;;  %v1438_v9 = vsel %vm210_vm13, 1.0, %v1849_v25 }
  0x9e   :  { %v230_v42 = vmin.f32 %v228_v39, 2.0  ;;  %v1437_v10 = vsel %vm209_vm14, 1.0, %v1849_v25 }
  0x9f   :  { %v234_v45 = vmul.f32 0.5, %v231_v40 }
  0xa0   :  { %v233_v48 = vmul.f32 0.5, %v230_v42 }
  0xa1   :  { %v236_v50 = vmul.f32 4.0, %v234_v45 }
  0xa2   :  { %v235_v52 = vmul.f32 4.0, %v233_v48 }
  0xa3   :  { %v238_v56 = vfloor.f32 %v236_v50 }
  0xa4   :  { %v237_v59 = vfloor.f32 %v235_v52  ;;  %v611_v52 = vpop.permute.xlu1 %610 }
  0xa5   :  { %v1738_v62 = vtrunc.f32 %v238_v56  ;;  %vm612_vm5 = vcmp.eq.s32.totalorder %v611_v52, 1 }
  0xa6   :  { %v1736_v63 = vtrunc.f32 %v237_v59 }
  0xa7   :  { %v1739_v4 = vcvt.f32.s32 %v1738_v62 }
  0xa8   :  { %v1737_v2 = vcvt.f32.s32 %v1736_v63 }
  0xa9   :  { %v243_v5 = vadd.s32 5, %v1739_v4 }
  0xaa   :  { %v242_v6 = vadd.s32 5, %v1737_v2 }
  0xab   :  { %v251_v7 = vsel %vm249_vm12, %v1735_v0, %v243_v5 }
  0xac   :  { %v250_v8 = vsel %vm249_vm12, %v1733_v1, %v242_v6  ;;  %vm257_vm0 = vcmp.eq.s32.totalorder %v251_v7, %v255_v3  ;;  %vm1421_vm12 = vcmask 58368  }
  0xad   :  { %vm256_vm1 = vcmp.eq.s32.totalorder %v250_v8, %v255_v3  ;;  %v259_v11 = vsel %vm257_vm0, %v1438_v9, 0.0  ;;  %v714_v8 = vpop.permute.xlu0 %713 }
  0xae   :  { %v258_v60 = vsel %vm256_vm1, %v1437_v10, 0.0  ;;  %1596 = vmatmul.mubr.msk.f32.vlgmr.msra.gmra.mxu1 %vm260_vm15, %v259_v11  ;;  %vm715_vm6 = vcmp.eq.s32.totalorder %v714_v8, 1 }
  0xaf   :  { %1573 = vmatmul.mubr.msk.f32.vlgmr.msra.gmra.mxu0 %vm260_vm15, %v258_v60  ;;  %1632 = vmatpush3.msra.mxu1 %v2075_v12 }
  0xb0   :  { %1599 = vmatpush3.msra.mxu0 %v2075_v12  ;;  %1606 = vmatprep.mubr.msk.f32.mxu0 %vm1850_vm8, %v1849_v25 }
  0xb1   :  { %1600 = vmatprep.subr.mxu0 %v1849_v25  ;;  %1633 = vmatprep.subr.mxu1 %v1849_v25 }
  0xb2   :  { %1601 = vmatpush3.msra.mxu0 %v2080_v14  ;;  %1634 = vmatpush3.msra.mxu1 %v2080_v14 }
  0xb3   :  { %1602 = vmatprep.subr.mxu0 %v1849_v25  ;;  %1635 = vmatprep.subr.mxu1 %v1849_v25 }
  0xb4   :  { %1603 = vmatpush3.msra.mxu0 %v2090_v15  ;;  %1636 = vmatpush3.msra.mxu1 %v2090_v15 }
  0xb5   :  { %1604 = vmatprep.subr.mxu0 %v1849_v25  ;;  %1637 = vmatprep.subr.mxu1 %v1849_v25 }
  0xb6   :  { %1605 = vmatpush3.msra.mxu0 %v2099_v16  ;;  %1638 = vmatpush3.msra.mxu1 %v2099_v16 }
  0xb7   :  { %1607 = vmatmul.mubr.f32.vlgmr.msra.gmra.mxu0 %v1849_v25  ;;  %1609 = vmatprep.subr.mxu0 %v1849_v25 }
  0xb8   :  { %1610 = vmatpush3.msra.mxu0 %v2075_v12  ;;  %1617 = vmatprep.mubr.msk.f32.mxu0 %vm1850_vm8, %v1849_v25 }
  0xb9   :  { %1611 = vmatprep.subr.mxu0 %v1849_v25  ;;  %1639 = vmatprep.mubr.msk.f32.mxu1 %vm1850_vm8, %v1849_v25 }
  0xba   :  { %1612 = vmatpush3.msra.mxu0 %v2080_v14  ;;  %1653 = vmatprep.subr.mxu1 %v1849_v25 }
  0xbb   :  { %1613 = vmatprep.subr.mxu0 %v1849_v25 }
  0xbc   :  { %1614 = vmatpush3.msra.mxu0 %v2090_v15 }
  0xbd   :  { %1615 = vmatprep.subr.mxu0 %v1849_v25 }
  0xbe   :  { %1616 = vmatpush3.msra.mxu0 %v2099_v16 }
  0xbf   :  { %1620 = vmatprep.subr.mxu0 %v1849_v25 }
 0x16e   :  { %v2123_v17 = vpop.f32.mrf.mxu1 }
 0x16f   :  { %v2125_v18 = vpop.f32.mrf.mxu0 }
 0x170   :  { %v1597_v19 = vpop.f32.mrf.mxu1 }
 0x171   :  { %v1574_v20 = vpop.f32.mrf.mxu0 }
 0x177   :  { %v481_v21 = vpop.f32.mrf.mxu0 }
 0x178   :  { %v486_v22 = vrot.slane %v481_v21, 1  ;;  %v489_v23 = vadd.f32 %v481_v21, %v2125_v18 }
 0x179   :  { %v1608_v24 = vpop.f32.mrf.mxu0 }
 0x17a   :  { %v490_v26 = vadd.f32 %v486_v22, %v2123_v17  ;;  %v1441_v27 = vmul.f32 -1.442695, %v489_v23 }
 0x17c   :  { %1757 = vpow2.f32 %v1441_v27  ;;  %v1442_v28 = vmul.f32 -1.442695, %v490_v26 }
 0x17e   :  { %1759 = vpow2.f32 %v1442_v28 }
 0x189   :  { %v1758_v29 = vpop.eup %1757 }
 0x18a   :  { %v497_v31 = vadd.f32 1.0, %v1758_v29 }
 0x18b   :  { %v1760_v30 = vpop.eup %1759 }
 0x18c   :  { %v498_v32 = vadd.f32 1.0, %v1760_v30 }
 0x18e   :  { %1761 = vrcp.f32 %v498_v32 }
 0x18f   :  { %1763 = vrcp.f32 %v497_v31 }
 0x19b   :  { %v1762_v33 = vpop.eup %1761 }
 0x19c   :  { %v512_v34 = vrot.slane %v1762_v33, 7  ;;  %v1764_v35 = vpop.eup %1763 }
 0x19e   :  { %v514_v36 = vsel %vm513_vm2, %v512_v34, %v1764_v35  ;;  %v818_v34 = vpop.permute.xlu1 %817 }
 0x19f   :  { %1618 = vmatmul.mubr.msk.f32.vlgmr.msra.gmra.mxu0 %vm411_vm3, %v514_v36  ;;  %v516_v53 = vsel %vm509_vm4, %v514_v36, 0.0  ;;  %vm819_vm7 = vcmp.eq.s32.totalorder %v818_v34, 1  ;;  %v1245_v34 = vld [vmem:[%s2307_s7 + $0x10] sm:$0xff] }
 0x1a0   :  { %1621 = vmatpush3.msra.mxu0 %v2075_v12  ;;  %1628 = vmatprep.mubr.msk.f32.mxu0 %vm1850_vm8, %v1849_v25 }
 0x1a1   :  { %1622 = vmatprep.subr.mxu0 %v1849_v25 }
 0x1a2   :  { %1623 = vmatpush3.msra.mxu0 %v2080_v14 }
 0x1a3   :  { %1624 = vmatprep.subr.mxu0 %v1849_v25 }
 0x1a4   :  { %1625 = vmatpush3.msra.mxu0 %v2090_v15 }
 0x1a5   :  { %1626 = vmatprep.subr.mxu0 %v1849_v25 }
 0x1a6   :  { %1627 = vmatpush3.msra.mxu0 %v2099_v16 }
 0x1a7   :  { %1642 = vmatprep.subr.mxu0 %v1849_v25 }
 0x25f   :  { %v585_v37 = vpop.f32.mrf.mxu0 }
 0x260   :  { %v590_v38 = vrot.slane %v585_v37, 7  ;;  %v594_v39 = vadd.f32 %v585_v37, %v2123_v17 }
 0x261   :  { %v1619_v40 = vpop.f32.mrf.mxu0 }
 0x262   :  { %v593_v41 = vadd.f32 %v590_v38, %v2125_v18  ;;  %v1446_v42 = vmul.f32 -1.442695, %v594_v39 }
 0x264   :  { %v1445_v43 = vmul.f32 -1.442695, %v593_v41  ;;  %1765 = vpow2.f32 %v1446_v42 }
 0x266   :  { %1767 = vpow2.f32 %v1445_v43 }
 0x271   :  { %v1766_v44 = vpop.eup %1765 }
 0x272   :  { %v602_v47 = vadd.f32 1.0, %v1766_v44 }
 0x273   :  { %v1768_v45 = vpop.eup %1767 }
 0x274   :  { %v601_v46 = vadd.f32 1.0, %v1768_v45 }
 0x276   :  { %1769 = vrcp.f32 %v601_v46 }
 0x277   :  { %1771 = vrcp.f32 %v602_v47 }
 0x283   :  { %v1770_v48 = vpop.eup %1769 }
 0x284   :  { %v615_v50 = vrot.slane %v1770_v48, 1  ;;  %v1772_v51 = vpop.eup %1771 }
 0x286   :  { %v616_v54 = vsel %vm513_vm2, %v1772_v51, %v615_v50 }
 0x287   :  { %v618_v55 = vsel %vm612_vm5, %v616_v54, %v516_v53  ;;  %1629 = vmatmul.mubr.msk.f32.vlgmr.msra.gmra.mxu0 %vm411_vm3, %v616_v54  ;;  %v922_v53 = vpop.permute.xlu0 %921 }
 0x288   :  { %1643 = vmatpush3.msra.mxu0 %v2075_v12  ;;  %1650 = vmatprep.mubr.msk.f32.mxu0 %vm1850_vm8, %v1849_v25  ;;  %vm923_vm9 = vcmp.eq.s32.totalorder %v922_v53, 1 }
 0x289   :  { %1644 = vmatprep.subr.mxu0 %v1849_v25 }
 0x28a   :  { %1645 = vmatpush3.msra.mxu0 %v2080_v14 }
 0x28b   :  { %1646 = vmatprep.subr.mxu0 %v1849_v25 }
 0x28c   :  { %1647 = vmatpush3.msra.mxu0 %v2090_v15 }
 0x28d   :  { %1648 = vmatprep.subr.mxu0 %v1849_v25 }
 0x28e   :  { %1649 = vmatpush3.msra.mxu0 %v2099_v16 }
 0x28f   :  { %1664 = vmatprep.subr.mxu0 %v1849_v25 }
 0x347   :  { %v687_v56 = vpop.f32.mrf.mxu0 }
 0x348   :  { %v692_v57 = vrot.slane %v687_v56, 6  ;;  %v693_v58 = vrot.slane %v687_v56, 7 }
 0x349   :  { %v1630_v13 = vpop.f32.mrf.mxu0 }
 0x34a   :  { %v696_v59 = vadd.f32 %v692_v57, %v2125_v18  ;;  %v697_v61 = vadd.f32 %v693_v58, %v2123_v17 }
 0x34c   :  { %v1448_v62 = vmul.f32 -1.442695, %v696_v59  ;;  %v1449_v63 = vmul.f32 -1.442695, %v697_v61 }
 0x34e   :  { %1773 = vpow2.f32 %v1448_v62 }
 0x34f   :  { %1775 = vpow2.f32 %v1449_v63 }
 0x35b   :  { %v1774_v0 = vpop.eup %1773 }
 0x35c   :  { %v1776_v4 = vpop.eup %1775  ;;  %v704_v1 = vadd.f32 1.0, %v1774_v0 }
 0x35d   :  { %v705_v2 = vadd.f32 1.0, %v1776_v4 }
 0x35e   :  { %1777 = vrcp.f32 %v704_v1  ;;  %v1026_v1 = vpop.permute.xlu1 %1025 }
 0x35f   :  { %1779 = vrcp.f32 %v705_v2  ;;  %vm1027_vm10 = vcmp.eq.s32.totalorder %v1026_v1, 1  ;;  %v1465_v1 = vld [vmem:[%s2308_s8] ss:$0 sm:$0xff] }
 0x36b   :  { %v1778_v3 = vpop.eup %1777 }
 0x36c   :  { %v1780_v5 = vpop.eup %1779  ;;  %v718_v6 = vrot.slane %v1778_v3, 2 }
 0x36d   :  { %v719_v7 = vrot.slane %v1780_v5, 1 }
 0x36f   :  { %v720_v9 = vsel %vm513_vm2, %v719_v7, %v718_v6 }
 0x370   :  { %v722_v10 = vsel %vm715_vm6, %v720_v9, %v618_v55  ;;  %1640 = vmatmul.mubr.msk.f32.vlgmr.msra.gmra.mxu1 %vm411_vm3, %v720_v9 }
 0x371   :  { %1654 = vmatpush3.msra.mxu1 %v2075_v12  ;;  %1661 = vmatprep.mubr.msk.f32.mxu1 %vm1850_vm8, %v1849_v25 }
 0x372   :  { %1655 = vmatprep.subr.mxu1 %v1849_v25 }
 0x373   :  { %1656 = vmatpush3.msra.mxu1 %v2080_v14 }
 0x374   :  { %1657 = vmatprep.subr.mxu1 %v1849_v25 }
 0x375   :  { %1658 = vmatpush3.msra.mxu1 %v2090_v15 }
 0x376   :  { %1659 = vmatprep.subr.mxu1 %v1849_v25 }
 0x377   :  { %1660 = vmatpush3.msra.mxu1 %v2099_v16 }
 0x378   :  { %1675 = vmatprep.subr.mxu1 %v1849_v25 }
 0x430   :  { %v791_v11 = vpop.f32.mrf.mxu1 }
 0x431   :  { %v796_v60 = vrot.slane %v791_v11, 5  ;;  %v797_v19 = vrot.slane %v791_v11, 6 }
 0x432   :  { %v1641_v20 = vpop.f32.mrf.mxu1 }
 0x433   :  { %v800_v21 = vadd.f32 %v796_v60, %v2125_v18  ;;  %v801_v22 = vadd.f32 %v797_v19, %v2123_v17 }
 0x435   :  { %v1451_v23 = vmul.f32 -1.442695, %v800_v21  ;;  %v1452_v24 = vmul.f32 -1.442695, %v801_v22 }
 0x437   :  { %1781 = vpow2.f32 %v1451_v23 }
 0x438   :  { %1783 = vpow2.f32 %v1452_v24 }
 0x444   :  { %v1782_v26 = vpop.eup %1781 }
 0x445   :  { %v1784_v27 = vpop.eup %1783  ;;  %v808_v28 = vadd.f32 1.0, %v1782_v26 }
 0x446   :  { %v809_v29 = vadd.f32 1.0, %v1784_v27 }
 0x447   :  { %1785 = vrcp.f32 %v808_v28  ;;  %v1130_v28 = vpop.permute.xlu0 %1129 }
 0x448   :  { %1787 = vrcp.f32 %v809_v29  ;;  %vm1131_vm11 = vcmp.eq.s32.totalorder %v1130_v28, 1 }
 0x454   :  { %v1786_v30 = vpop.eup %1785 }
 0x455   :  { %v1788_v31 = vpop.eup %1787  ;;  %v822_v32 = vrot.slane %v1786_v30, 3 }
 0x456   :  { %v823_v33 = vrot.slane %v1788_v31, 2 }
 0x458   :  { %v824_v35 = vsel %vm513_vm2, %v823_v33, %v822_v32  ;;  %v1246_v33 = vld [vmem:[%s2307_s7 + $0x18] sm:$0xff] }
 0x459   :  { %v826_v36 = vsel %vm819_vm7, %v824_v35, %v722_v10  ;;  %1651 = vmatmul.mubr.msk.f32.vlgmr.msra.gmra.mxu0 %vm411_vm3, %v824_v35  ;;  %v1244_v35 = vld [vmem:[%s2307_s7 + $0x8] sm:$0xff] }
 0x45a   :  { %1665 = vmatpush3.msra.mxu0 %v2075_v12  ;;  %1672 = vmatprep.mubr.msk.f32.mxu0 %vm1850_vm8, %v1849_v25 }
 0x45b   :  { %1666 = vmatprep.subr.mxu0 %v1849_v25 }
 0x45c   :  { %1667 = vmatpush3.msra.mxu0 %v2080_v14 }
 0x45d   :  { %1668 = vmatprep.subr.mxu0 %v1849_v25 }
 0x45e   :  { %1669 = vmatpush3.msra.mxu0 %v2090_v15 }
 0x45f   :  { %1670 = vmatprep.subr.mxu0 %v1849_v25 }
 0x460   :  { %1671 = vmatpush3.msra.mxu0 %v2099_v16 }
 0x461   :  { %1686 = vmatprep.subr.mxu0 %v1849_v25 }
 0x519   :  { %v895_v37 = vpop.f32.mrf.mxu0 }
 0x51a   :  { %v900_v38 = vrot.slane %v895_v37, 4  ;;  %v901_v39 = vrot.slane %v895_v37, 5  ;;  %v1343_v37 = vld [vmem:[%s2309_s9 + $0x78] sm:$0xff] }
 0x51b   :  { %v1652_v40 = vpop.f32.mrf.mxu0 }
 0x51c   :  { %v904_v41 = vadd.f32 %v900_v38, %v2125_v18  ;;  %v905_v42 = vadd.f32 %v901_v39, %v2123_v17  ;;  %v1342_v38 = vld [vmem:[%s2309_s9 + $0x70] sm:$0xff]  ;;  %v1341_v39 = vld [vmem:[%s2309_s9 + $0x68] sm:$0xff]  ;;  %v1340_v40 = vld [vmem:[%s2309_s9 + $0x60] sm:$0xff] }
 0x51e   :  { %v1454_v43 = vmul.f32 -1.442695, %v904_v41  ;;  %v1455_v44 = vmul.f32 -1.442695, %v905_v42  ;;  %v1339_v41 = vld [vmem:[%s2309_s9 + $0x58] sm:$0xff]  ;;  %v1338_v42 = vld [vmem:[%s2309_s9 + $0x50] sm:$0xff] }
 0x520   :  { %1789 = vpow2.f32 %v1454_v43  ;;  %v1337_v43 = vld [vmem:[%s2309_s9 + $0x48] sm:$0xff] }
 0x521   :  { %1791 = vpow2.f32 %v1455_v44 }
 0x52d   :  { %v1790_v45 = vpop.eup %1789 }
 0x52e   :  { %v1792_v46 = vpop.eup %1791  ;;  %v912_v47 = vadd.f32 1.0, %v1790_v45 }
 0x52f   :  { %v913_v48 = vadd.f32 1.0, %v1792_v46 }
 0x530   :  { %1793 = vrcp.f32 %v912_v47 }
 0x531   :  { %1795 = vrcp.f32 %v913_v48 }
 0x53d   :  { %v1794_v49 = vpop.eup %1793 }
 0x53e   :  { %v1796_v50 = vpop.eup %1795  ;;  %v926_v51 = vrot.slane %v1794_v49, 4 }
 0x53f   :  { %v927_v52 = vrot.slane %v1796_v50, 3 }
 0x541   :  { %v928_v54 = vsel %vm513_vm2, %v927_v52, %v926_v51 }
 0x542   :  { %v930_v55 = vsel %vm923_vm9, %v928_v54, %v826_v36  ;;  %1662 = vmatmul.mubr.msk.f32.vlgmr.msra.gmra.mxu1 %vm411_vm3, %v928_v54  ;;  %v1243_v36 = vld [vmem:[%s2307_s7] sm:$0xff] }
 0x543   :  { %1676 = vmatpush3.msra.mxu1 %v2075_v12  ;;  %1683 = vmatprep.mubr.msk.f32.mxu1 %vm1850_vm8, %v1849_v25 }
 0x544   :  { %1677 = vmatprep.subr.mxu1 %v1849_v25 }
 0x545   :  { %1678 = vmatpush3.msra.mxu1 %v2080_v14 }
 0x546   :  { %1679 = vmatprep.subr.mxu1 %v1849_v25 }
 0x547   :  { %1680 = vmatpush3.msra.mxu1 %v2090_v15 }
 0x548   :  { %1681 = vmatprep.subr.mxu1 %v1849_v25 }
 0x549   :  { %1682 = vmatpush3.msra.mxu1 %v2099_v16 }
 0x54a   :  { %1697 = vmatprep.subr.mxu1 %v1849_v25 }
 0x602   :  { %v999_v56 = vpop.f32.mrf.mxu1 }
 0x603   :  { %v1004_v57 = vrot.slane %v999_v56, 3  ;;  %v1005_v12 = vrot.slane %v999_v56, 4 }
 0x604   :  { %v1663_v58 = vpop.f32.mrf.mxu1 }
 0x605   :  { %v1008_v13 = vadd.f32 %v1004_v57, %v2125_v18  ;;  %v1009_v59 = vadd.f32 %v1005_v12, %v2123_v17  ;;  %v1234_v12 = vpop.permute.xlu1 %1233 }
 0x607   :  { %v1457_v61 = vmul.f32 -1.442695, %v1008_v13  ;;  %v1458_v14 = vmul.f32 -1.442695, %v1009_v59 }
 0x609   :  { %1797 = vpow2.f32 %v1457_v61  ;;  %v1335_v61 = vld [vmem:[%s2309_s9 + $0x38] sm:$0xff] }
 0x60a   :  { %1799 = vpow2.f32 %v1458_v14  ;;  %v1334_v14 = vld [vmem:[%s2309_s9 + $0x30] sm:$0xff] }
 0x616   :  { %v1798_v62 = vpop.eup %1797 }
 0x617   :  { %v1800_v15 = vpop.eup %1799  ;;  %v1016_v63 = vadd.f32 1.0, %v1798_v62  ;;  %v1333_v62 = vld [vmem:[%s2309_s9 + $0x28] sm:$0xff] }
 0x618   :  { %v1017_v0 = vadd.f32 1.0, %v1800_v15  ;;  %v1332_v15 = vld [vmem:[%s2309_s9 + $0x20] sm:$0xff] }
 0x619   :  { %1801 = vrcp.f32 %v1016_v63  ;;  %v1331_v63 = vld [vmem:[%s2309_s9 + $0x18] sm:$0xff] }
 0x61a   :  { %1803 = vrcp.f32 %v1017_v0  ;;  %v1330_v0 = vld [vmem:[%s2309_s9 + $0x10] sm:$0xff] }
 0x626   :  { %v1802_v16 = vpop.eup %1801 }
 0x627   :  { %v1804_v4 = vpop.eup %1803  ;;  %v1030_v2 = vrot.slane %v1802_v16, 5  ;;  %v1329_v16 = vld [vmem:[%s2309_s9 + $0x8] sm:$0xff] }
 0x628   :  { %v1031_v3 = vrot.slane %v1804_v4, 4  ;;  %v1328_v4 = vld [vmem:[%s2309_s9] sm:$0xff] }
 0x62a   :  { %v1032_v5 = vsel %vm513_vm2, %v1031_v3, %v1030_v2 }
 0x62b   :  { %v1034_v6 = vsel %vm1027_vm10, %v1032_v5, %v930_v55  ;;  %1673 = vmatmul.mubr.msk.f32.vlgmr.msra.gmra.mxu0 %vm411_vm3, %v1032_v5 }
 0x62c   :  { %1694 = vmatprep.mubr.msk.f32.mxu0 %vm1850_vm8, %v1849_v25  ;;  %1687 = vmatpush3.msra.mxu0 %v1246_v33 }
 0x62d   :  { %1688 = vmatprep.subr.mxu0 %v1849_v25 }
 0x62e   :  { %1689 = vmatpush3.msra.mxu0 %v1245_v34 }
 0x62f   :  { %1690 = vmatprep.subr.mxu0 %v1849_v25 }
 0x630   :  { %1691 = vmatpush3.msra.mxu0 %v1244_v35 }
 0x631   :  { %1692 = vmatprep.subr.mxu0 %v1849_v25 }
 0x632   :  { %1693 = vmatpush3.msra.mxu0 %v1243_v36 }
 0x6eb   :  { %v1103_v7 = vpop.f32.mrf.mxu0 }
 0x6ec   :  { %v1108_v8 = vrot.slane %v1103_v7, 2  ;;  %v1109_v9 = vrot.slane %v1103_v7, 3  ;;  %v1467_v7 = vld [vmem:[%s2310_s10] ss:$0 sm:$0xff] }
 0x6ed   :  { %v1674_v10 = vpop.f32.mrf.mxu0 }
 0x6ee   :  { %v1112_v11 = vadd.f32 %v1108_v8, %v2125_v18  ;;  %v1113_v60 = vadd.f32 %v1109_v9, %v2123_v17 }
 0x6f0   :  { %v1460_v19 = vmul.f32 -1.442695, %v1112_v11  ;;  %v1461_v20 = vmul.f32 -1.442695, %v1113_v60 }
 0x6f2   :  { %1805 = vpow2.f32 %v1460_v19 }
 0x6f3   :  { %1807 = vpow2.f32 %v1461_v20 }
 0x6ff   :  { %v1806_v21 = vpop.eup %1805 }
 0x700   :  { %v1808_v22 = vpop.eup %1807  ;;  %v1120_v23 = vadd.f32 1.0, %v1806_v21 }
 0x701   :  { %v1121_v24 = vadd.f32 1.0, %v1808_v22 }
 0x702   :  { %1809 = vrcp.f32 %v1120_v23 }
 0x703   :  { %1811 = vrcp.f32 %v1121_v24 }
 0x70f   :  { %v1810_v26 = vpop.eup %1809 }
 0x710   :  { %v1812_v27 = vpop.eup %1811  ;;  %v1134_v29 = vrot.slane %v1810_v26, 6 }
 0x711   :  { %v1135_v30 = vrot.slane %v1812_v27, 5 }
 0x713   :  { %v1136_v31 = vsel %vm513_vm2, %v1135_v30, %v1134_v29 }
 0x714   :  { %1684 = vmatmul.mubr.msk.f32.vlgmr.msra.gmra.mxu1 %vm411_vm3, %v1136_v31  ;;  %v1138_v32 = vsel %vm1131_vm11, %v1136_v31, %v1034_v6 }
 0x715   :  { %1729 = vmatprep.mubr.msk.f32.mxu1 %vm1850_vm8, %v1849_v25  ;;  %1698 = vmatpush3.msra.mxu1 %v1343_v37  ;;  %vm1235_vm8 = vcmp.eq.s32.totalorder %v1234_v12, 1 }
 0x716   :  { %1699 = vmatprep.subr.mxu1 %v1849_v25 }
 0x717   :  { %1700 = vmatpush3.msra.mxu1 %v1342_v38 }
 0x718   :  { %1701 = vmatprep.subr.mxu1 %v1849_v25 }
 0x719   :  { %1702 = vmatpush3.msra.mxu1 %v1341_v39 }
 0x71a   :  { %1703 = vmatprep.subr.mxu1 %v1849_v25 }
 0x71b   :  { %1704 = vmatpush3.msra.mxu1 %v1340_v40 }
 0x71c   :  { %1705 = vmatprep.subr.mxu1 %v1849_v25 }
 0x71d   :  { %1706 = vmatpush3.msra.mxu1 %v1339_v41 }
 0x71e   :  { %1707 = vmatprep.subr.mxu1 %v1849_v25 }
 0x71f   :  { %1708 = vmatpush3.msra.mxu1 %v1338_v42 }
 0x720   :  { %1709 = vmatprep.subr.mxu1 %v1849_v25 }
 0x721   :  { %1710 = vmatpush3.msra.mxu1 %v1337_v43 }
 0x722   :  { %1711 = vmatprep.subr.mxu1 %v1849_v25 }
 0x7d4   :  { %v1207_v44 = vpop.f32.mrf.mxu1 }
 0x7d5   :  { %v1212_v45 = vrot.slane %v1207_v44, 1  ;;  %v1213_v46 = vrot.slane %v1207_v44, 2 }
 0x7d6   :  { %v1685_v47 = vpop.f32.mrf.mxu1 }
 0x7d7   :  { %v1216_v48 = vadd.f32 %v1212_v45, %v2125_v18  ;;  %v1217_v49 = vadd.f32 %v1213_v46, %v2123_v17  ;;  %v1336_v17 = vld [vmem:[%s2309_s9 + $0x40] sm:$0xff]  ;;  %s1429_s9 = sshll.u32 %s1851_s23, 4  ;;  %s1430_s9 = int_to_ptr.vmem [resolvable:$true] %s1429_s9 }
 0x7d8   :  { %1712 = vmatpush3.msra.mxu1 %v1336_v17  ;;  %s1823_s24 = scalar_lea.vmem %s1430_s9, 32  ;;  %p1828_p1 = scmp.lt.s32.totalorder %s1430_s9, %s1430_s9 }
 0x7d9   :  { %v1463_v50 = vmul.f32 -1.442695, %v1216_v48  ;;  %v1464_v51 = vmul.f32 -1.442695, %v1217_v49  ;;  %1713 = vmatprep.subr.mxu1 %v1849_v25  ;;  %p1824_p0 = scmp.ne.s32.totalorder %s1430_s9, %s1823_s24  ;;  %p1829_p2 = scmp.lt.s32.totalorder %s1823_s24, %s1823_s24 }
 0x7da   :  { %1714 = vmatpush3.msra.mxu1 %v1335_v61 }
 0x7db   :  { %1813 = vpow2.f32 %v1463_v50  ;;  %1715 = vmatprep.subr.mxu1 %v1849_v25  ;;  %p1830_p3 = por %p1829_p2, %p1828_p1 }
 0x7dc   :  { %1815 = vpow2.f32 %v1464_v51  ;;  %1716 = vmatpush3.msra.mxu1 %v1334_v14 }
 0x7dd   :  { %1717 = vmatprep.subr.mxu1 %v1849_v25  ;;  %p1831_p4 = pnand %p1830_p3, %p1824_p0 }
 0x7de   :  { %1718 = vmatpush3.msra.mxu1 %v1333_v62 }
 0x7df   :  { %1719 = vmatprep.subr.mxu1 %v1849_v25 }
 0x7e0   :  { %1720 = vmatpush3.msra.mxu1 %v1332_v15 }
 0x7e1   :  { %1721 = vmatprep.subr.mxu1 %v1849_v25 }
 0x7e2   :  { %1722 = vmatpush3.msra.mxu1 %v1331_v63 }
 0x7e3   :  { %1723 = vmatprep.subr.mxu1 %v1849_v25 }
 0x7e4   :  { %1724 = vmatpush3.msra.mxu1 %v1330_v0 }
 0x7e5   :  { %1725 = vmatprep.subr.mxu1 %v1849_v25 }
 0x7e6   :  { %1726 = vmatpush3.msra.mxu1 %v1329_v16 }
 0x7e7   :  { %1727 = vmatprep.subr.mxu1 %v1849_v25 }
 0x7e8   :  { %v1814_v52 = vpop.eup %1813  ;;  %1728 = vmatpush3.msra.mxu1 %v1328_v4 }
 0x7e9   :  { %v1816_v53 = vpop.eup %1815  ;;  %v1224_v54 = vadd.f32 1.0, %v1814_v52 }
 0x7ea   :  { %v1225_v55 = vadd.f32 1.0, %v1816_v53 }
 0x7eb   :  { %1817 = vrcp.f32 %v1224_v54 }
 0x7ec   :  { %1819 = vrcp.f32 %v1225_v55 }
 0x7f8   :  { %v1818_v56 = vpop.eup %1817 }
 0x7f9   :  { %v1820_v57 = vpop.eup %1819  ;;  %v1238_v58 = vrot.slane %v1818_v56, 7 }
 0x7fa   :  { %v1239_v13 = vrot.slane %v1820_v57, 6 }
 0x7fc   :  { %v1240_v18 = vsel %vm513_vm2, %v1239_v13, %v1238_v58 }
 0x7fd   :  { %v1242_v59 = vsel %vm1235_vm8, %v1240_v18, %v1138_v32 }
 0x7fe   :  { %1695 = vmatmul.mubr.msk.f32.vlgmr.msra.gmra.mxu0 %vm411_vm3, %v1242_v59 }
 0x8be   :  { %v1323_v2 = vpop.f32.mrf.mxu0 }
 0x8bf   :  { %v1324_v3 = vadd.f32 %v1465_v1, %v1323_v2 }
 0x8c0   :  { %v1696_v5 = vpop.f32.mrf.mxu0 }
 0x8c1   :  { %1821 = vtanh.f32 %v1324_v3 }
 0x8ce   :  { %v1822_v6 = vpop.eup %1821 }
 0x8cf   :  { %1730 = vmatmul.mubr.f32.vlgmr.msra.gmra.mxu1 %v1822_v6 }
 0x98f   :  { %v1417_v8 = vpop.f32.mrf.mxu1 }
 0x990   :  { %v1418_v25 = vadd.f32 %v1467_v7, %v1417_v8 }
 0x991   :  { %v1731_v9 = vpop.f32.mrf.mxu1 }
 0x992   :  { %1422 = vst.msk [vmem:[#allocation2] sm:$0x3] %vm1421_vm12, %v1418_v25 }
 0x993   :  { %1834 = shalt.err (!%p1831_p4)
}
 0x994   :  { %1432 = dma.vmem_to_hbm [thread:$0]  %s1430_s9, 32, %s2311_s11, [#allocation3]  }
 0x995   :  { %1843 = dma.done.wait [#allocation3], 32  }
 0x996   :  { %1844 = vsyncadd [#allocation3], 4294967264 }
 0x997   :  { %1436 = vsyncpa [#allocation3], 1 }

</bundles_post_ra>
